<compile_context>
chip_gen: v7x
topology: tpu7x:2x2x1
jax: 0.10.0
libtpu: 0.0.40
codegen_flags: <defaults>
</compile_context>

<pallas_src>
import functools

import jax
import jax.numpy as jnp
from jax.experimental import pallas as pl
from jax.experimental.pallas import tpu as pltpu


def _tn_conv_kernel(x_ref, w_ref, b_ref, o_ref, *,
                    dia, W, C_in, C_out, TM, PT, use_mxu):
    # x_ref: (1, C_in, H*W)   one NCHW image, pixels on lanes (resident across
    #                         the pixel-tile grid axis)
    # w_ref: (C_out, 3*C_in)  K-folded taps; column k*C_in+ci = tap k, channel ci
    # b_ref: (C_out, 1)       f32 bias
    # o_ref: (1, C_out, TM)   lane-dense NCHW output tile
    dW = dia * W
    if PT == 1:
        xwin = x_ref[0]                                      # (C_in, TM + 2*dW)
    else:
        # TM % 128 == 0 by construction -> aligned dynamic window load.
        base = pl.multiple_of(pl.program_id(1) * TM, 128)
        xwin = x_ref[0, :, pl.ds(base, TM + 2 * dW)]         # halo'd window

    taps = [xwin[:, k * dW:k * dW + TM] for k in range(3)]   # 3 x (C_in, TM)

    if use_mxu:
        # Single K-folded MXU dot: final (C_out, TM) produced in one push.
        xk = jnp.concatenate(taps, axis=0)                   # (3*C_in, TM)
        acc = jnp.dot(w_ref[...], xk,
                      preferred_element_type=jnp.float32)    # (C_out, TM) f32
    else:
        # Tiny K: MXU would be mostly padding -> broadcast VPU FMAs (f32 acc).
        w = w_ref[...]                                       # (C_out, 3*C_in) f32
        acc = jnp.zeros((C_out, TM), jnp.float32)
        for k in range(3):
            xt = taps[k].astype(jnp.float32)                 # (C_in, TM)
            for ci in range(C_in):
                j = k * C_in + ci
                acc = acc + w[:, j:j + 1] * xt[ci:ci + 1, :]

    acc = acc + b_ref[...]                                   # bias (lane broadcast)
    o_ref[0] = jnp.maximum(acc, 0.0).astype(o_ref.dtype)     # ReLU
    # TODO(synk): Dropout(p) after ReLU is identity at inference; omitted.


def _pick_pixel_tile(m, max_lanes=2048, min_lanes=512):
    """Largest output-pixel tile that is a multiple of 128 lanes and divides m."""
    if m <= max_lanes or m % 128 != 0:
        return m
    for tm in range(max_lanes, min_lanes - 1, -128):
        if m % tm == 0:
            return tm
    return m


def tn_module_forward(x_nchw, w_v, w_g, bias, *, dia=1):
    """Pallas TPU implementation of TN_module.forward.

    x_nchw: (N, C_in, H, W)      activations (pass bf16 for the fast path)
    w_v:    (C_out, C_in, 3, 1)  weight_norm direction parameter `v`
    w_g:    (C_out,)             weight_norm magnitude parameter `g`
    bias:   (C_out,)
    """
    N, C_in, H, W = x_nchw.shape
    C_out = w_v.shape[0]
    H_out = H - 2 * dia                      # (3,1) kernel, dilation dia, no pad
    assert H_out > 0, "input height too small for the (3,1) dilated kernel"

    m = H_out * W                            # output pixels per image
    TM = _pick_pixel_tile(m)
    PT = m // TM
    use_mxu = (3 * C_in) > 32                # tiny K -> VPU-FMA path instead

    # weight_norm reparameterization: W = g * v / ||v|| per out-channel
    # (no epsilon -- matches torch.nn.utils.weight_norm; all-zero v row -> NaN).
    v_flat = w_v.reshape(C_out, -1).astype(jnp.float32)
    v_norm = jnp.sqrt(jnp.sum(v_flat * v_flat, axis=1, keepdims=True))
    w_eff = (w_g.reshape(C_out, 1).astype(jnp.float32) * v_flat / v_norm)
    w_eff = w_eff.reshape(C_out, C_in, 3)
    # K-fold layout: w2[co, k*C_in + ci] = w_eff[co, ci, k]
    w2 = jnp.transpose(w_eff, (0, 2, 1)).reshape(C_out, 3 * C_in)
    if use_mxu:
        w2 = w2.astype(x_nchw.dtype)         # bf16 activations => bf16 MXU operands
    b2 = bias.reshape(C_out, 1).astype(jnp.float32)

    x_flat = x_nchw.reshape(N, C_in, H * W)  # free reshape (row-major, no copy)

    kernel = functools.partial(_tn_conv_kernel, dia=dia, W=W, C_in=C_in,
                               C_out=C_out, TM=TM, PT=PT, use_mxu=use_mxu)

    itemsize = x_nchw.dtype.itemsize
    in_block = C_in * H * W * itemsize
    out_block = C_out * TM * itemsize
    w_bytes = w2.size * w2.dtype.itemsize + C_out * 4
    inter = 3 * C_in * TM * itemsize + C_out * TM * 4   # tap stack + f32 acc
    vmem_est = 2 * in_block + 2 * out_block + w_bytes + inter + (1 << 20)
    vmem_limit = int(min(max(vmem_est, 32 << 20), 64 << 20))

    cost = pl.CostEstimate(
        flops=2 * 3 * C_in * C_out * m * N,
        transcendentals=0,
        bytes_accessed=(x_flat.size * itemsize
                        + w2.size * w2.dtype.itemsize
                        + b2.size * 4
                        + N * C_out * m * itemsize))

    out = pl.pallas_call(
        kernel,
        out_shape=jax.ShapeDtypeStruct((N, C_out, m), x_nchw.dtype),
        grid_spec=pltpu.PrefetchScalarGridSpec(
            num_scalar_prefetch=0,
            grid=(N, PT),
            in_specs=[
                pl.BlockSpec((1, C_in, H * W), lambda n, t: (n, 0, 0)),
                pl.BlockSpec((C_out, 3 * C_in), lambda n, t: (0, 0)),
                pl.BlockSpec((C_out, 1), lambda n, t: (0, 0)),
            ],
            out_specs=pl.BlockSpec((1, C_out, TM), lambda n, t: (n, 0, t)),
        ),
        compiler_params=pltpu.CompilerParams(
            dimension_semantics=("parallel", "parallel"),
            vmem_limit_bytes=vmem_limit),
        cost_estimate=cost,
    )(x_flat, w2, b2)

    # TODO(synk): for H_out*W that is huge and not a multiple of 128, add an
    # H-halo manual-DMA tiling path (memory_space=pl.ANY) instead of the
    # single full-image input block.
    return out.reshape(N, C_out, H_out, W)   # already NCHW; free reshape


def _reference(x, w_v, w_g, bias, dia=1):
    C_out = w_v.shape[0]
    v = w_v.reshape(C_out, -1).astype(jnp.float32)
    nrm = jnp.sqrt(jnp.sum(v * v, axis=1, keepdims=True))
    w = (w_g.reshape(C_out, 1).astype(jnp.float32) * v / nrm).reshape(w_v.shape)
    y = jax.lax.conv_general_dilated(
        x.astype(jnp.float32), w, window_strides=(1, 1), padding="VALID",
        rhs_dilation=(dia, dia),
        dimension_numbers=("NCHW", "OIHW", "NCHW"),
        precision=jax.lax.Precision.HIGHEST)
    return jnp.maximum(y + bias.reshape(1, -1, 1, 1).astype(jnp.float32), 0.0)


if __name__ == "__main__":
    key = jax.random.PRNGKey(0)
    keys = jax.random.split(key, 8)

    # --- Test 1: module-sized shapes (small channels -> VPU-FMA path) -------
    N, C_in, C_out, H, W, dia = 2, 4, 8, 16, 16, 1
    x = jax.random.normal(keys[0], (N, C_in, H, W), dtype=jnp.float32)
    w_v = 0.01 * jax.random.normal(keys[1], (C_out, C_in, 3, 1), dtype=jnp.float32)
    w_g = 0.5 + jax.random.uniform(keys[2], (C_out,), dtype=jnp.float32)
    bias = 0.1 * jax.random.normal(keys[3], (C_out,), dtype=jnp.float32)

    fwd = jax.jit(functools.partial(tn_module_forward, dia=dia))
    y_ref = _reference(x, w_v, w_g, bias, dia=dia)

    # f32 (matches PyTorch module numerics)
    y32 = jax.block_until_ready(fwd(x, w_v, w_g, bias))
    assert y32.shape == (N, C_out, H - 2 * dia, W)
    assert jnp.allclose(y32, y_ref, atol=1e-4, rtol=1e-4)

    # bf16 activations/output = default inference path (halves HBM traffic,
    # f32 accumulate in-kernel).
    y16 = jax.block_until_ready(fwd(x.astype(jnp.bfloat16), w_v, w_g, bias))
    assert y16.dtype == jnp.bfloat16
    assert jnp.allclose(y16.astype(jnp.float32), y_ref, atol=1e-1, rtol=1e-1)

    # --- Test 2: larger channels + pixel-tiled grid (K-folded MXU path) -----
    N2, C_in2, C_out2, H2, W2, dia2 = 1, 32, 48, 34, 128, 1   # m=4096 -> 2 tiles
    x2 = jax.random.normal(keys[4], (N2, C_in2, H2, W2), dtype=jnp.float32)
    w_v2 = 0.01 * jax.random.normal(keys[5], (C_out2, C_in2, 3, 1), dtype=jnp.float32)
    w_g2 = 0.5 + jax.random.uniform(keys[6], (C_out2,), dtype=jnp.float32)
    bias2 = 0.1 * jax.random.normal(keys[7], (C_out2,), dtype=jnp.float32)

    fwd2 = jax.jit(functools.partial(tn_module_forward, dia=dia2))
    y2_ref = _reference(x2, w_v2, w_g2, bias2, dia=dia2)

    y2 = jax.block_until_ready(fwd2(x2, w_v2, w_g2, bias2))
    assert y2.shape == (N2, C_out2, H2 - 2 * dia2, W2)
    assert jnp.allclose(y2, y2_ref, atol=2e-2, rtol=2e-2)

    y2_16 = jax.block_until_ready(fwd2(x2.astype(jnp.bfloat16), w_v2, w_g2, bias2))
    assert jnp.allclose(y2_16.astype(jnp.float32), y2_ref, atol=1e-1, rtol=1e-1)

    print("KERNEL_OK")
</pallas_src>

<mosaic_0001>
module attributes {stable_mosaic.version = 11 : i64} {
  func.func @_tn_conv_kernel(%arg0: i32, %arg1: i32, %arg2: memref<1x4x256xf32, #tpu.memory_space<vmem>>, %arg3: memref<8x12xf32, #tpu.memory_space<vmem>>, %arg4: memref<8x1xf32, #tpu.memory_space<vmem>>, %arg5: memref<1x8x224xf32, #tpu.memory_space<vmem>>) attributes {dimension_semantics = [#tpu.dimension_semantics<parallel>, #tpu.dimension_semantics<parallel>], iteration_bounds = array<i64: 2, 1>, scalar_prefetch = 0 : i64, scratch_operands = 0 : i64, tpu.core_type = #tpu.core_type<tc>, window_params = [{transform_indices = @transform_0, window_bounds = array<i64: 1, 4, 256>}, {pipeline_mode = #tpu.pipeline_mode<synchronous>, transform_indices = @transform_1, window_bounds = array<i64: 8, 12>}, {pipeline_mode = #tpu.pipeline_mode<synchronous>, transform_indices = @transform_2, window_bounds = array<i64: 8, 1>}, {transform_indices = @transform_3, window_bounds = array<i64: 1, 8, 224>}]} {
    %c0 = arith.constant 0 : index
    %c0_0 = arith.constant 0 : index
    %c0_1 = arith.constant 0 : index
    %0 = vector.load %arg2[%c0, %c0_0, %c0_1] : memref<1x4x256xf32, #tpu.memory_space<vmem>>, vector<1x4x256xf32>
    %1 = vector.shape_cast %0 : vector<1x4x256xf32> to vector<4x256xf32>
    %2 = vector.extract_strided_slice %1 {offsets = [0, 0], sizes = [4, 224], strides = [1, 1]} : vector<4x256xf32> to vector<4x224xf32>
    %3 = vector.extract_strided_slice %1 {offsets = [0, 16], sizes = [4, 224], strides = [1, 1]} : vector<4x256xf32> to vector<4x224xf32>
    %4 = vector.extract_strided_slice %1 {offsets = [0, 32], sizes = [4, 224], strides = [1, 1]} : vector<4x256xf32> to vector<4x224xf32>
    %c0_2 = arith.constant 0 : index
    %c0_3 = arith.constant 0 : index
    %5 = vector.load %arg3[%c0_2, %c0_3] : memref<8x12xf32, #tpu.memory_space<vmem>>, vector<8x12xf32>
    %cst = arith.constant 0.000000e+00 : f32
    %6 = vector.broadcast %cst : f32 to vector<8x224xf32>
    %7 = vector.extract_strided_slice %5 {offsets = [0, 0], sizes = [8, 1], strides = [1, 1]} : vector<8x12xf32> to vector<8x1xf32>
    %8 = vector.extract_strided_slice %2 {offsets = [0, 0], sizes = [1, 224], strides = [1, 1]} : vector<4x224xf32> to vector<1x224xf32>
    %9 = vector.broadcast %7 : vector<8x1xf32> to vector<8x224xf32>
    %10 = vector.broadcast %8 : vector<1x224xf32> to vector<8x224xf32>
    %11 = arith.mulf %9, %10 : vector<8x224xf32>
    %12 = arith.addf %6, %11 : vector<8x224xf32>
    %13 = vector.extract_strided_slice %5 {offsets = [0, 1], sizes = [8, 1], strides = [1, 1]} : vector<8x12xf32> to vector<8x1xf32>
    %14 = vector.extract_strided_slice %2 {offsets = [1, 0], sizes = [1, 224], strides = [1, 1]} : vector<4x224xf32> to vector<1x224xf32>
    %15 = vector.broadcast %13 : vector<8x1xf32> to vector<8x224xf32>
    %16 = vector.broadcast %14 : vector<1x224xf32> to vector<8x224xf32>
    %17 = arith.mulf %15, %16 : vector<8x224xf32>
    %18 = arith.addf %12, %17 : vector<8x224xf32>
    %19 = vector.extract_strided_slice %5 {offsets = [0, 2], sizes = [8, 1], strides = [1, 1]} : vector<8x12xf32> to vector<8x1xf32>
    %20 = vector.extract_strided_slice %2 {offsets = [2, 0], sizes = [1, 224], strides = [1, 1]} : vector<4x224xf32> to vector<1x224xf32>
    %21 = vector.broadcast %19 : vector<8x1xf32> to vector<8x224xf32>
    %22 = vector.broadcast %20 : vector<1x224xf32> to vector<8x224xf32>
    %23 = arith.mulf %21, %22 : vector<8x224xf32>
    %24 = arith.addf %18, %23 : vector<8x224xf32>
    %25 = vector.extract_strided_slice %5 {offsets = [0, 3], sizes = [8, 1], strides = [1, 1]} : vector<8x12xf32> to vector<8x1xf32>
    %26 = vector.extract_strided_slice %2 {offsets = [3, 0], sizes = [1, 224], strides = [1, 1]} : vector<4x224xf32> to vector<1x224xf32>
    %27 = vector.broadcast %25 : vector<8x1xf32> to vector<8x224xf32>
    %28 = vector.broadcast %26 : vector<1x224xf32> to vector<8x224xf32>
    %29 = arith.mulf %27, %28 : vector<8x224xf32>
    %30 = arith.addf %24, %29 : vector<8x224xf32>
    %31 = vector.extract_strided_slice %5 {offsets = [0, 4], sizes = [8, 1], strides = [1, 1]} : vector<8x12xf32> to vector<8x1xf32>
    %32 = vector.extract_strided_slice %3 {offsets = [0, 0], sizes = [1, 224], strides = [1, 1]} : vector<4x224xf32> to vector<1x224xf32>
    %33 = vector.broadcast %31 : vector<8x1xf32> to vector<8x224xf32>
    %34 = vector.broadcast %32 : vector<1x224xf32> to vector<8x224xf32>
    %35 = arith.mulf %33, %34 : vector<8x224xf32>
    %36 = arith.addf %30, %35 : vector<8x224xf32>
    %37 = vector.extract_strided_slice %5 {offsets = [0, 5], sizes = [8, 1], strides = [1, 1]} : vector<8x12xf32> to vector<8x1xf32>
    %38 = vector.extract_strided_slice %3 {offsets = [1, 0], sizes = [1, 224], strides = [1, 1]} : vector<4x224xf32> to vector<1x224xf32>
    %39 = vector.broadcast %37 : vector<8x1xf32> to vector<8x224xf32>
    %40 = vector.broadcast %38 : vector<1x224xf32> to vector<8x224xf32>
    %41 = arith.mulf %39, %40 : vector<8x224xf32>
    %42 = arith.addf %36, %41 : vector<8x224xf32>
    %43 = vector.extract_strided_slice %5 {offsets = [0, 6], sizes = [8, 1], strides = [1, 1]} : vector<8x12xf32> to vector<8x1xf32>
    %44 = vector.extract_strided_slice %3 {offsets = [2, 0], sizes = [1, 224], strides = [1, 1]} : vector<4x224xf32> to vector<1x224xf32>
    %45 = vector.broadcast %43 : vector<8x1xf32> to vector<8x224xf32>
    %46 = vector.broadcast %44 : vector<1x224xf32> to vector<8x224xf32>
    %47 = arith.mulf %45, %46 : vector<8x224xf32>
    %48 = arith.addf %42, %47 : vector<8x224xf32>
    %49 = vector.extract_strided_slice %5 {offsets = [0, 7], sizes = [8, 1], strides = [1, 1]} : vector<8x12xf32> to vector<8x1xf32>
    %50 = vector.extract_strided_slice %3 {offsets = [3, 0], sizes = [1, 224], strides = [1, 1]} : vector<4x224xf32> to vector<1x224xf32>
    %51 = vector.broadcast %49 : vector<8x1xf32> to vector<8x224xf32>
    %52 = vector.broadcast %50 : vector<1x224xf32> to vector<8x224xf32>
    %53 = arith.mulf %51, %52 : vector<8x224xf32>
    %54 = arith.addf %48, %53 : vector<8x224xf32>
    %55 = vector.extract_strided_slice %5 {offsets = [0, 8], sizes = [8, 1], strides = [1, 1]} : vector<8x12xf32> to vector<8x1xf32>
    %56 = vector.extract_strided_slice %4 {offsets = [0, 0], sizes = [1, 224], strides = [1, 1]} : vector<4x224xf32> to vector<1x224xf32>
    %57 = vector.broadcast %55 : vector<8x1xf32> to vector<8x224xf32>
    %58 = vector.broadcast %56 : vector<1x224xf32> to vector<8x224xf32>
    %59 = arith.mulf %57, %58 : vector<8x224xf32>
    %60 = arith.addf %54, %59 : vector<8x224xf32>
    %61 = vector.extract_strided_slice %5 {offsets = [0, 9], sizes = [8, 1], strides = [1, 1]} : vector<8x12xf32> to vector<8x1xf32>
    %62 = vector.extract_strided_slice %4 {offsets = [1, 0], sizes = [1, 224], strides = [1, 1]} : vector<4x224xf32> to vector<1x224xf32>
    %63 = vector.broadcast %61 : vector<8x1xf32> to vector<8x224xf32>
    %64 = vector.broadcast %62 : vector<1x224xf32> to vector<8x224xf32>
    %65 = arith.mulf %63, %64 : vector<8x224xf32>
    %66 = arith.addf %60, %65 : vector<8x224xf32>
    %67 = vector.extract_strided_slice %5 {offsets = [0, 10], sizes = [8, 1], strides = [1, 1]} : vector<8x12xf32> to vector<8x1xf32>
    %68 = vector.extract_strided_slice %4 {offsets = [2, 0], sizes = [1, 224], strides = [1, 1]} : vector<4x224xf32> to vector<1x224xf32>
    %69 = vector.broadcast %67 : vector<8x1xf32> to vector<8x224xf32>
    %70 = vector.broadcast %68 : vector<1x224xf32> to vector<8x224xf32>
    %71 = arith.mulf %69, %70 : vector<8x224xf32>
    %72 = arith.addf %66, %71 : vector<8x224xf32>
    %73 = vector.extract_strided_slice %5 {offsets = [0, 11], sizes = [8, 1], strides = [1, 1]} : vector<8x12xf32> to vector<8x1xf32>
    %74 = vector.extract_strided_slice %4 {offsets = [3, 0], sizes = [1, 224], strides = [1, 1]} : vector<4x224xf32> to vector<1x224xf32>
    %75 = vector.broadcast %73 : vector<8x1xf32> to vector<8x224xf32>
    %76 = vector.broadcast %74 : vector<1x224xf32> to vector<8x224xf32>
    %77 = arith.mulf %75, %76 : vector<8x224xf32>
    %78 = arith.addf %72, %77 : vector<8x224xf32>
    %c0_4 = arith.constant 0 : index
    %c0_5 = arith.constant 0 : index
    %79 = vector.load %arg4[%c0_4, %c0_5] : memref<8x1xf32, #tpu.memory_space<vmem>>, vector<8x1xf32>
    %80 = vector.broadcast %79 : vector<8x1xf32> to vector<8x224xf32>
    %81 = arith.addf %78, %80 : vector<8x224xf32>
    %cst_6 = arith.constant 0.000000e+00 : f32
    %82 = vector.broadcast %cst_6 : f32 to vector<8x224xf32>
    %83 = arith.maximumf %81, %82 : vector<8x224xf32>
    %c0_7 = arith.constant 0 : index
    %c0_8 = arith.constant 0 : index
    %c0_9 = arith.constant 0 : index
    %84 = vector.load %arg5[%c0_7, %c0_8, %c0_9] : memref<1x8x224xf32, #tpu.memory_space<vmem>>, vector<1x8x224xf32>
    %85 = vector.shape_cast %84 : vector<1x8x224xf32> to vector<8x224xf32>
    %86 = vector.shape_cast %83 : vector<8x224xf32> to vector<1x8x224xf32>
    tpu.vector_store %arg5[%c0_7, %c0_8, %c0_9], %86 {strides = array<i32>} : memref<1x8x224xf32, #tpu.memory_space<vmem>>, vector<1x8x224xf32>,
    return
  }
  func.func @transform_0(%arg0: i32, %arg1: i32) -> (i32, i32, i32) {
    %c0_i32 = arith.constant 0 : i32
    %c0_i32_0 = arith.constant 0 : i32
    %c0_i32_1 = arith.constant 0 : i32
    return %arg0, %c0_i32, %c0_i32_0 : i32, i32, i32
  }
  func.func @transform_1(%arg0: i32, %arg1: i32) -> (i32, i32) {
    %c0_i32 = arith.constant 0 : i32
    %c0_i32_0 = arith.constant 0 : i32
    %c0_i32_1 = arith.constant 0 : i32
    return %c0_i32, %c0_i32_0 : i32, i32
  }
  func.func @transform_2(%arg0: i32, %arg1: i32) -> (i32, i32) {
    %c0_i32 = arith.constant 0 : i32
    %c0_i32_0 = arith.constant 0 : i32
    %c0_i32_1 = arith.constant 0 : i32
    return %c0_i32, %c0_i32_0 : i32, i32
  }
  func.func @transform_3(%arg0: i32, %arg1: i32) -> (i32, i32, i32) {
    %c0_i32 = arith.constant 0 : i32
    %c0_i32_0 = arith.constant 0 : i32
    return %arg0, %c0_i32, %arg1 : i32, i32, i32
  }
}

</mosaic_0001>

<bundles_post_ra>
// kernel: tn_module_forward.1
= control target key start
LH: loop header
LB: loop body
LE: loop exit
PB: predicated region body
PF: predicated region fallthrough
CT: control target
= control target key end

     0   :  { %s654_s12 = smov 0   ;;  %s656_s13 = smov 0   ;;  %s722_s0 = inlined_call_operand.vmem [shape: f32[2,4,256], index: 0, kind: input, shape index: {}]   ;;  %s723_s1 = inlined_call_operand.vmem [shape: f32[8,12], index: 1, kind: input, shape index: {}]   ;;  %s724_s2 = inlined_call_operand.vmem [shape: f32[8,1], index: 2, kind: input, shape index: {}]   ;;  %s725_s3 = inlined_call_operand.vmem [shape: f32[2,8,224], index: 3, kind: output, shape index: {}]  }
   0x1   :  { %s658_s14 = smov 0  }
   0x2 LB: > { %s25_s15 = sadd.s32 1, %s614_s13  ;;  %p537_p0 = scmp.ge.s32.totalorder %s618_s14, 1  ;;  %s618_s14 = sphi %s658_s14, %s13_s14   ;;  %s614_s13 = sphi %s656_s13, %s727_s13   ;;  %s610_s12 = sphi %s654_s12, %s726_s12  }
   0x3   : > { %p27_p1 = scmp.ge.s32.totalorder %s25_s15, 2  ;;  %p151_p2 = scmp.lt.s32.totalorder %s618_s14, 3 }
   0x5   : > { %s729_s15 = smov (%p27_p1, %s25_s15), 0  ;;  %p152_p3 = pnand %p537_p0, %p151_p2 }
   0x6   : > { %v195_v0 = vld [vmem:[%s723_s1] sm:$0xff] (!%p152_p3)  ;;  %v620_v1 = vmov (!%p152_p3), 4   ;;  %v621_v2 = vmov (!%p152_p3), 6   ;;  %v622_v3 = vmov (!%p152_p3), 5   ;;  %v623_v4 = vmov (!%p152_p3), 7   ;;  %p179_p4 = scmp.lt.s32.totalorder (!%p152_p3), %s610_s12, 1 }
   0x7   : > { %155 = sbr.rel (%p152_p3) target bundleno = 297 (0x129), region = 32  ;;  %584 = vset.pattern.permute.xlu0 (!%p152_p3), %v620_v1  ;;  %586 = vset.pattern.permute.xlu1 (!%p152_p3), %v621_v2  ;;  %v624_v5 = vmov (!%p152_p3), 8   ;;  %v625_v6 = vmov (!%p152_p3), 9   ;;  %v626_v7 = vmov (!%p152_p3), 10   ;;  %v627_v8 = vmov (!%p152_p3), 3   ;;  %v440_v11 = vld [vmem:[%s724_s2] sm:$0xff] (!%p152_p3) }
   0x8   : > { %303 = vperm.xlu0 (!%p152_p3), %584, %v195_v0   ;;  %338 = vperm.xlu1 (!%p152_p3), %586, %v195_v0   ;;  %v628_v9 = vmov (!%p152_p3), 11   ;;  %v629_v10 = vmov (!%p152_p3), 0   ;;  %v630_v12 = vmov (!%p152_p3), 1   ;;  %v631_v13 = vmov (!%p152_p3), 2   ;;  %s632_s24 = smov (!%p152_p3), 112   ;;  %s633_s25 = smov (!%p152_p3), 96  }
   0x9   : > { %v202_v14 = vlaneseq (!%p152_p3)  ;;  %vm314_vm0 = vcmask (!%p152_p3), 916480   ;;  %vm383_vm1 = vcmask (!%p152_p3), 785408  }
   0xb   : > { %v203_v15 = vshrl.u32 (!%p152_p3), %v202_v14, 7 }
   0xc   : > { %585 = vset.pattern.permute.xlu0 (!%p152_p3), %v622_v3  ;;  %587 = vset.pattern.permute.xlu1 (!%p152_p3), %v623_v4 }
   0xd   : > { %321 = vperm.xlu0 (!%p152_p3), %585, %v195_v0   ;;  %355 = vperm.xlu1 (!%p152_p3), %587, %v195_v0   ;;  %v204_v16 = vsub.s32 (!%p152_p3), 0, %v203_v15  ;;  %v208_v18 = vsub.s32 (!%p152_p3), 4, %v203_v15  ;;  %v230_v20 = vsub.s32 (!%p152_p3), 1, %v203_v15  ;;  %v234_v21 = vsub.s32 (!%p152_p3), 5, %v203_v15 }
   0xe   : > { %s731_s12 = smov (!%p179_p4, %s610_s12), 1  ;;  %v256_v22 = vsub.s32 2, %v203_v15  ;;  %v282_v29 = vsub.s32 3, %v203_v15  ;;  %v260_v32 = vsub.s32 6, %v203_v15  ;;  %v286_v36 = vsub.s32 7, %v203_v15 }
   0xf   : > { %s544_s20 = sshll.u32 %s731_s12, 3  ;;  %s545_s26 = sshll.u32 %s731_s12, 4 }
  0x10   : > { %s183_s23 = scalar_lea.vmem %s722_s0, %s544_s20  ;;  %s192_s29 = scalar_lea.vmem %s725_s3, %s545_s26 }
  0x11   : > { %588 = vset.pattern.permute.xlu1 %v624_v5  ;;  %589 = vset.pattern.permute.xlu0 %v625_v6  ;;  %v194_v17 = vld [vmem:[%s183_s23] sm:$0xff] }
  0x12   : > { %372 = vperm.xlu1 %588, %v195_v0   ;;  %390 = vperm.xlu0 %589, %v195_v0   ;;  %v205_v19 = vrot.slane %v194_v17, %v204_v16  ;;  %v209_v23 = vrot.slane %v194_v17, %v208_v18  ;;  %v231_v25 = vrot.slane %v194_v17, %v230_v20 }
  0x13   : > { %v235_v26 = vrot.slane %v194_v17, %v234_v21  ;;  %v257_v28 = vrot.slane %v194_v17, %v256_v22  ;;  %v283_v38 = vrot.slane %v194_v17, %v282_v29  ;;  %v261_v41 = vrot.slane %v194_v17, %v260_v32 }
  0x14   : > { %v215_v24 = vrot.slane %v205_v19, %v204_v16  ;;  %v219_v30 = vrot.slane %v209_v23, %v204_v16  ;;  %v241_v34 = vrot.slane %v231_v25, %v230_v20  ;;  %v287_v45 = vrot.slane %v194_v17, %v286_v36 }
  0x15   : > { %v245_v35 = vrot.slane %v235_v26, %v230_v20  ;;  %v267_v37 = vrot.slane %v257_v28, %v256_v22  ;;  %v293_v47 = vrot.slane %v283_v38, %v282_v29  ;;  %v271_v48 = vrot.slane %v261_v41, %v256_v22 }
  0x16   : > { %590 = vset.pattern.permute.xlu1 %v626_v7  ;;  %594 = vset.pattern.permute.xlu0 %v627_v8  ;;  %v297_v49 = vrot.slane %v287_v45, %v282_v29 }
  0x17   : > { %407 = vperm.xlu1 %590, %v195_v0   ;;  %277 = vperm.xlu0 %594, %v195_v0  }
  0x1b   : > { %591 = vset.pattern.permute.xlu1 %v628_v9  ;;  %595 = vset.pattern.permute.xlu0 %v629_v10 }
  0x1c   : > { %424 = vperm.xlu1 %591, %v195_v0   ;;  %198 = vperm.xlu0 %595, %v195_v0  }
  0x20   : > { %592 = vset.pattern.permute.xlu1 %v630_v12  ;;  %443 = vperm.xlu0 %595, %v440_v11  }
  0x21   : > { %225 = vperm.xlu1 %592, %v195_v0  }
  0x25   : > { %593 = vset.pattern.permute.xlu1 %v631_v13 }
  0x26   : > { %251 = vperm.xlu1 %593, %v195_v0  }
  0x87   : > { %v304_v27 = vpop.permute.xlu0 %303  ;;  %v339_v33 = vpop.permute.xlu1 %338 }
  0x88   : > { %v306_v31 = vmul.f32 %v304_v27, %v215_v24  ;;  %v307_v39 = vmul.f32 %v304_v27, %v219_v30  ;;  %v341_v46 = vmul.f32 %v339_v33, %v267_v37  ;;  %v342_v52 = vmul.f32 %v339_v33, %v271_v48 }
  0x8a   : > { %310 = vrot.lane.b32.xlu1 %v306_v31, %s632_s24 }
  0x8c   : > { %v322_v40 = vpop.permute.xlu0 %321  ;;  %v356_v44 = vpop.permute.xlu1 %355 }
  0x8d   : > { %v324_v42 = vmul.f32 %v322_v40, %v241_v34  ;;  %v325_v43 = vmul.f32 %v322_v40, %v245_v35  ;;  %v358_v51 = vmul.f32 %v356_v44, %v293_v47  ;;  %v359_v54 = vmul.f32 %v356_v44, %v297_v49 }
  0x8e   : > { %312 = vrot.lane.b32.xlu1 %v307_v39, %s632_s24 }
  0x8f   : > { %328 = vrot.lane.b32.xlu0 %v324_v42, %s632_s24 }
  0x91   : > { %v391_v50 = vpop.permute.xlu0 %390  ;;  %v373_v53 = vpop.permute.xlu1 %372 }
  0x92   : > { %330 = vrot.lane.b32.xlu1 %v325_v43, %s632_s24  ;;  %v375_v56 = vmul.f32 %v373_v53, %v215_v24  ;;  %v376_v58 = vmul.f32 %v373_v53, %v219_v30  ;;  %v393_v59 = vmul.f32 %v391_v50, %v241_v34  ;;  %v394_v62 = vmul.f32 %v391_v50, %v245_v35 }
  0x93   : > { %345 = vrot.lane.b32.xlu0 %v341_v46, %s632_s24 }
  0x96   : > { %347 = vrot.lane.b32.xlu1 %v342_v52, %s632_s24  ;;  %v278_v55 = vpop.permute.xlu0 %277  ;;  %v408_v57 = vpop.permute.xlu1 %407 }
  0x97   : > { %362 = vrot.lane.b32.xlu0 %v358_v51, %s632_s24  ;;  %v410_v5 = vmul.f32 %v408_v57, %v267_v37  ;;  %v298_v9 = vmul.f32 %v293_v47, %v278_v55  ;;  %v299_v10 = vmul.f32 %v297_v49, %v278_v55  ;;  %v411_v13 = vmul.f32 %v408_v57, %v271_v48 }
  0x9a   : > { %364 = vrot.lane.b32.xlu1 %v359_v54, %s632_s24 }
  0x9b   : > { %379 = vrot.lane.b32.xlu0 %v375_v56, %s633_s25  ;;  %v425_v60 = vpop.permute.xlu1 %424  ;;  %v199_v61 = vpop.permute.xlu0 %198 }
  0x9c   : > { %v427_v63 = vmul.f32 %v425_v60, %v293_v47  ;;  %v220_v0 = vmul.f32 %v215_v24, %v199_v61  ;;  %v221_v1 = vmul.f32 %v219_v30, %v199_v61  ;;  %v428_v16 = vmul.f32 %v425_v60, %v297_v49 }
  0x9e   : > { %381 = vrot.lane.b32.xlu1 %v376_v58, %s633_s25 }
  0x9f   : > { %397 = vrot.lane.b32.xlu0 %v393_v59, %s633_s25  ;;  %v444_v19 = vpop.permute.xlu0 %443 }
  0xa0   : > { %v226_v2 = vpop.permute.xlu1 %225 }
  0xa1   : > { %v246_v3 = vmul.f32 %v241_v34, %v226_v2  ;;  %v247_v4 = vmul.f32 %v245_v35, %v226_v2 }
  0xa2   : > { %399 = vrot.lane.b32.xlu1 %v394_v62, %s633_s25 }
  0xa3   : > { %431 = vrot.lane.b32.xlu0 %v427_v63, %s633_s25  ;;  %v248_v6 = vadd.f32 %v246_v3, %v220_v0  ;;  %v249_v7 = vadd.f32 %v247_v4, %v221_v1 }
  0xa5   : > { %v252_v8 = vpop.permute.xlu1 %251 }
  0xa6   : > { %414 = vrot.lane.b32.xlu1 %v410_v5, %s633_s25  ;;  %v272_v11 = vmul.f32 %v267_v37, %v252_v8  ;;  %v273_v12 = vmul.f32 %v271_v48, %v252_v8 }
  0xa8   : > { %v274_v14 = vadd.f32 %v272_v11, %v248_v6  ;;  %v275_v15 = vadd.f32 %v273_v12, %v249_v7 }
  0xaa   : > { %416 = vrot.lane.b32.xlu1 %v411_v13, %s633_s25  ;;  %v301_v17 = vadd.f32 %v299_v10, %v275_v15  ;;  %v300_v18 = vadd.f32 %v298_v9, %v274_v14 }
  0xae   : > { %433 = vrot.lane.b32.xlu1 %v428_v16, %s633_s25 }
  0xfc   : > { %v311_v20 = vpop.permute.xlu1 %310 }
 0x100   : > { %v313_v21 = vpop.permute.xlu1 %312 }
 0x101   : > { %v329_v22 = vpop.permute.xlu0 %328  ;;  %v315_v29 = vsel %vm314_vm0, %v311_v20, %v313_v21  ;;  %v319_v31 = vadd.f32 %v313_v21, %v301_v17 }
 0x102   : > { %v318_v33 = vadd.f32 %v315_v29, %v300_v18 }
 0x104   : > { %v331_v23 = vpop.permute.xlu1 %330 }
 0x105   : > { %v346_v24 = vpop.permute.xlu0 %345  ;;  %v332_v32 = vsel %vm314_vm0, %v329_v22, %v331_v23  ;;  %v336_v35 = vadd.f32 %v331_v23, %v319_v31 }
 0x106   : > { %v335_v37 = vadd.f32 %v332_v32, %v318_v33 }
 0x108   : > { %v348_v25 = vpop.permute.xlu1 %347 }
 0x109   : > { %v363_v26 = vpop.permute.xlu0 %362  ;;  %v349_v36 = vsel %vm314_vm0, %v346_v24, %v348_v25  ;;  %v353_v38 = vadd.f32 %v348_v25, %v336_v35 }
 0x10a   : > { %v352_v40 = vadd.f32 %v349_v36, %v335_v37 }
 0x10c   : > { %v365_v27 = vpop.permute.xlu1 %364 }
 0x10d   : > { %v380_v30 = vpop.permute.xlu0 %379  ;;  %v366_v39 = vsel %vm314_vm0, %v363_v26, %v365_v27  ;;  %v370_v43 = vadd.f32 %v365_v27, %v353_v38 }
 0x10e   : > { %v369_v45 = vadd.f32 %v366_v39, %v352_v40 }
 0x110   : > { %v382_v28 = vpop.permute.xlu1 %381 }
 0x111   : > { %v398_v41 = vpop.permute.xlu0 %397  ;;  %v384_v44 = vsel %vm383_vm1, %v380_v30, %v382_v28  ;;  %v388_v46 = vadd.f32 %v382_v28, %v370_v43 }
 0x112   : > { %v387_v48 = vadd.f32 %v384_v44, %v369_v45 }
 0x114   : > { %v400_v34 = vpop.permute.xlu1 %399 }
 0x115   : > { %v401_v47 = vsel %vm383_vm1, %v398_v41, %v400_v34  ;;  %v405_v50 = vadd.f32 %v400_v34, %v388_v46  ;;  %v432_v53 = vpop.permute.xlu0 %431 }
 0x116   : > { %v404_v52 = vadd.f32 %v401_v47, %v387_v48 }
 0x118   : > { %v415_v42 = vpop.permute.xlu1 %414 }
 0x11c   : > { %v417_v49 = vpop.permute.xlu1 %416 }
 0x11d   : > { %v418_v51 = vsel %vm383_vm1, %v415_v42, %v417_v49  ;;  %v422_v54 = vadd.f32 %v417_v49, %v405_v50 }
 0x11e   : > { %v421_v55 = vadd.f32 %v418_v51, %v404_v52 }
 0x120   : > { %v434_v56 = vpop.permute.xlu1 %433 }
 0x121   : > { %v435_v57 = vsel %vm383_vm1, %v432_v53, %v434_v56  ;;  %v439_v58 = vadd.f32 %v434_v56, %v422_v54 }
 0x122   : > { %v438_v59 = vadd.f32 %v435_v57, %v421_v55 }
 0x123   : > { %v447_v60 = vadd.f32 %v444_v19, %v439_v58 }
 0x124   : > { %v446_v61 = vadd.f32 %v444_v19, %v438_v59 }
 0x125   : > { %v449_v62 = vmax.f32 %v447_v60, 0.0 }
 0x126   : > { %v448_v63 = vmax.f32 %v446_v61, 0.0 }
 0x127   : > { %451 = vst.msk [vmem:[%s192_s29 + $0x8] sm:$0xff] %vm383_vm1, %v449_v62 }
 0x128   : > { %450 = vst [vmem:[%s192_s29] sm:$0xff] %v448_v63 }
 0x129 PF: > { %s13_s14 = sadd.s32 1, %s618_s14   ;;  %s726_s12 = smov %s614_s13 }
 0x12a   : > { %p10_p5 = scmp.ge.s32.totalorder %s13_s14, 4   ;;  %s727_s13 = smov %s729_s15 }
 0x12c   :  { %12 = sbr.rel (!%p10_p5) target bundleno = 2 (0x2), region = 62 }

</bundles_post_ra>
